<compile_context>
chip_gen: v6e
topology: v6e:2x2x1
jax: 0.10.0
libtpu: 0.0.40
codegen_flags: <defaults>
</compile_context>

<pallas_src>
import jax
import jax.numpy as jnp
from jax.experimental import pallas as pl
from jax.experimental.pallas import tpu as pltpu


def mlp_kernel(x_ref, w1_ref, b1_ref, w2_ref, w3_ref, b3_ref, y_ref):
    # x_ref:  [x_size, tb]   (batch on lanes; may be bf16)
    # w1_ref: [32, x_size]   b1_ref: [32, 1]
    # w2_ref: [32, 32]
    # w3_ref: [8, 32]        b3_ref: [8, 1]
    # y_ref:  [8, tb]
    x = x_ref[...].astype(jnp.float32)
    # fc1 + relu  -> [32, tb], lane-dense
    h = jnp.dot(w1_ref[...], x, preferred_element_type=jnp.float32)
    h = jnp.maximum(h + b1_ref[...], 0.0)
    # fc2 (no bias) + relu -> [32, tb]
    h = jnp.dot(w2_ref[...], h, preferred_element_type=jnp.float32)
    h = jnp.maximum(h, 0.0)
    # fc3 + bias -> [8, tb]
    y = jnp.dot(w3_ref[...], h, preferred_element_type=jnp.float32) + b3_ref[...]
    y_ref[...] = y.astype(y_ref.dtype)


def waypoint_forward(x_fm, params, tb=8192, x_dtype=None):
    """Forward pass of WaypointDistributionNN via one Pallas kernel.

    x_fm:    [x_size, B] feature-major input (batch on the 128-lane axis).
    params:  (w1 [32, x_size], b1 [32, 1], w2 [32, 32], w3 [8, 32], b3 [8, 1])
             -- PyTorch [out, in] weight layout.
    tb:      batch tile on the lane axis (forced to a multiple of 128, clamped
             so the grid has >= 2 steps whenever B > 128 -> v7x megacore).
    x_dtype: optional narrower streaming dtype for x (e.g. jnp.bfloat16);
             accumulation stays f32.
    Returns y_fm: [8, B] float32, y_fm[:, b] == module.forward(x[b]).
    """
    w1, b1, w2, w3, b3 = params
    xs, B = x_fm.shape
    hid = w1.shape[0]
    out = w3.shape[0]

    if x_dtype is not None:
        x_fm = x_fm.astype(x_dtype)

    # Lane-axis tile: multiple of 128, and small enough that the grid has at
    # least 2 steps whenever the batch spans >= 2 lane groups (v7x: 2 TCs).
    tb = (max(int(tb), 128) // 128) * 128
    n_lane_groups = pl.cdiv(B, 128)
    if n_lane_groups >= 2:
        tb = min(tb, (n_lane_groups // 2) * 128)
    else:
        tb = 128

    grid = (pl.cdiv(B, tb),)  # last block may be partial; Pallas bounds the DMAs

    y = pl.pallas_call(
        mlp_kernel,
        out_shape=jax.ShapeDtypeStruct((out, B), jnp.float32),
        grid_spec=pltpu.PrefetchScalarGridSpec(
            num_scalar_prefetch=0,
            grid=grid,
            in_specs=[
                pl.BlockSpec((xs, tb), lambda i: (0, i)),     # x tile (streamed)
                pl.BlockSpec((hid, xs), lambda i: (0, 0)),    # fc1 weight (resident)
                pl.BlockSpec((hid, 1), lambda i: (0, 0)),     # fc1 bias
                pl.BlockSpec((hid, hid), lambda i: (0, 0)),   # fc2 weight
                pl.BlockSpec((out, hid), lambda i: (0, 0)),   # fc3 weight
                pl.BlockSpec((out, 1), lambda i: (0, 0)),     # fc3 bias
            ],
            out_specs=pl.BlockSpec((out, tb), lambda i: (0, i)),
        ),
        compiler_params=pltpu.CompilerParams(
            dimension_semantics=("parallel",)),
    )(x_fm, w1, b1, w2, w3, b3)

    return y


def init_params(key, x_size, hidden=32, out=8):
    """nn.Linear default init (uniform +/- 1/sqrt(fan_in)) plus the
    fc3.weight[:, 4:] *= 10 tweak.  Weights kept [out, in]; biases [out, 1]."""
    k1, k2, k3, k4, k5 = jax.random.split(key, 5)

    lim1 = 1.0 / jnp.sqrt(float(x_size))
    w1 = jax.random.uniform(k1, (hidden, x_size), jnp.float32, -lim1, lim1)
    b1 = jax.random.uniform(k2, (hidden,), jnp.float32, -lim1, lim1)

    lim2 = 1.0 / jnp.sqrt(float(hidden))
    w2 = jax.random.uniform(k3, (hidden, hidden), jnp.float32, -lim2, lim2)

    lim3 = 1.0 / jnp.sqrt(float(hidden))
    w3 = jax.random.uniform(k4, (out, hidden), jnp.float32, -lim3, lim3)
    b3 = jax.random.uniform(k5, (out,), jnp.float32, -lim3, lim3)

    # fc3.weight is [out=8, in=32]; PyTorch scales input columns 4..31.
    w3 = w3.at[:, 4:].multiply(10.0)

    return (w1, b1[:, None], w2, w3, b3[:, None])


def reference_forward(x_fm, params, x_dtype=None):
    w1, b1, w2, w3, b3 = params
    x = x_fm
    if x_dtype is not None:
        x = x.astype(x_dtype).astype(jnp.float32)
    h = jnp.maximum(w1 @ x + b1, 0.0)
    h = jnp.maximum(w2 @ h, 0.0)
    return w3 @ h + b3


if __name__ == "__main__":
    key = jax.random.PRNGKey(0)
    kx, kp = jax.random.split(key)

    x_size = 16
    params = init_params(kp, x_size)

    # (A) default tile path: tb auto-clamps to 256 here -> grid=(2,), so the
    #     "parallel" axis spans both TensorCores on v7x.
    batch = 512
    x_fm = jax.random.normal(kx, (x_size, batch), jnp.float32)
    y = jax.block_until_ready(waypoint_forward(x_fm, params))
    y_ref = reference_forward(x_fm, params)
    assert y.shape == (8, batch)
    assert jnp.allclose(y, y_ref, atol=1e-4, rtol=1e-4), "mismatch vs reference"

    # (B) ragged batch (300, not a multiple of 128): exercises the partial
    #     last block (no jnp.pad copy, masked edge store).
    x2 = jax.random.normal(jax.random.PRNGKey(1), (x_size, 300), jnp.float32)
    y2 = jax.block_until_ready(waypoint_forward(x2, params, tb=128))
    assert y2.shape == (8, 300)
    assert jnp.allclose(y2, reference_forward(x2, params), atol=1e-4, rtol=1e-4), \
        "mismatch vs reference (ragged batch)"

    # (C) bf16 x stream (halves the dominant HBM read; f32 accumulation).
    y3 = jax.block_until_ready(
        waypoint_forward(x_fm, params, x_dtype=jnp.bfloat16))
    y3_ref = reference_forward(x_fm, params, x_dtype=jnp.bfloat16)
    assert y3.shape == (8, batch)
    assert jnp.allclose(y3, y3_ref, atol=1e-3, rtol=1e-3), \
        "mismatch vs reference (bf16 x stream)"

    print("KERNEL_OK")
</pallas_src>

<mosaic_0001>
module attributes {stable_mosaic.version = 11 : i64} {
  func.func @mlp_kernel(%arg0: i32, %arg1: memref<16x256xf32, #tpu.memory_space<vmem>>, %arg2: memref<32x16xf32, #tpu.memory_space<vmem>>, %arg3: memref<32x1xf32, #tpu.memory_space<vmem>>, %arg4: memref<32x32xf32, #tpu.memory_space<vmem>>, %arg5: memref<8x32xf32, #tpu.memory_space<vmem>>, %arg6: memref<8x1xf32, #tpu.memory_space<vmem>>, %arg7: memref<8x256xf32, #tpu.memory_space<vmem>>) attributes {dimension_semantics = [#tpu.dimension_semantics<parallel>], iteration_bounds = array<i64: 2>, scalar_prefetch = 0 : i64, scratch_operands = 0 : i64, tpu.core_type = #tpu.core_type<tc>, window_params = [{transform_indices = @transform_0, window_bounds = array<i64: 16, 256>}, {pipeline_mode = #tpu.pipeline_mode<synchronous>, transform_indices = @transform_1, window_bounds = array<i64: 32, 16>}, {pipeline_mode = #tpu.pipeline_mode<synchronous>, transform_indices = @transform_2, window_bounds = array<i64: 32, 1>}, {pipeline_mode = #tpu.pipeline_mode<synchronous>, transform_indices = @transform_3, window_bounds = array<i64: 32, 32>}, {pipeline_mode = #tpu.pipeline_mode<synchronous>, transform_indices = @transform_4, window_bounds = array<i64: 8, 32>}, {pipeline_mode = #tpu.pipeline_mode<synchronous>, transform_indices = @transform_5, window_bounds = array<i64: 8, 1>}, {transform_indices = @transform_6, window_bounds = array<i64: 8, 256>}]} {
    %c0 = arith.constant 0 : index
    %c0_0 = arith.constant 0 : index
    %0 = vector.load %arg1[%c0, %c0_0] : memref<16x256xf32, #tpu.memory_space<vmem>>, vector<16x256xf32>
    %c0_1 = arith.constant 0 : index
    %c0_2 = arith.constant 0 : index
    %1 = vector.load %arg2[%c0_1, %c0_2] : memref<32x16xf32, #tpu.memory_space<vmem>>, vector<32x16xf32>
    %cst = arith.constant dense<0.000000e+00> : vector<32x256xf32>
    %2 = tpu.matmul %1, %0, %cst {dimension_numbers = #tpu.dot_dimension_numbers<[1], [0], [0], [1], [0, 0, 1, 1], [], []>} : vector<32x16xf32>, vector<16x256xf32>, vector<32x256xf32> -> vector<32x256xf32>
    %c0_3 = arith.constant 0 : index
    %c0_4 = arith.constant 0 : index
    %3 = vector.load %arg3[%c0_3, %c0_4] : memref<32x1xf32, #tpu.memory_space<vmem>>, vector<32x1xf32>
    %4 = vector.broadcast %3 : vector<32x1xf32> to vector<32x256xf32>
    %5 = arith.addf %2, %4 : vector<32x256xf32>
    %cst_5 = arith.constant 0.000000e+00 : f32
    %6 = vector.broadcast %cst_5 : f32 to vector<32x256xf32>
    %7 = arith.maximumf %5, %6 : vector<32x256xf32>
    %c0_6 = arith.constant 0 : index
    %c0_7 = arith.constant 0 : index
    %8 = vector.load %arg4[%c0_6, %c0_7] : memref<32x32xf32, #tpu.memory_space<vmem>>, vector<32x32xf32>
    %cst_8 = arith.constant dense<0.000000e+00> : vector<32x256xf32>
    %9 = tpu.matmul %8, %7, %cst_8 {dimension_numbers = #tpu.dot_dimension_numbers<[1], [0], [0], [1], [0, 0, 1, 1], [], []>} : vector<32x32xf32>, vector<32x256xf32>, vector<32x256xf32> -> vector<32x256xf32>
    %cst_9 = arith.constant 0.000000e+00 : f32
    %10 = vector.broadcast %cst_9 : f32 to vector<32x256xf32>
    %11 = arith.maximumf %9, %10 : vector<32x256xf32>
    %c0_10 = arith.constant 0 : index
    %c0_11 = arith.constant 0 : index
    %12 = vector.load %arg5[%c0_10, %c0_11] : memref<8x32xf32, #tpu.memory_space<vmem>>, vector<8x32xf32>
    %cst_12 = arith.constant dense<0.000000e+00> : vector<8x256xf32>
    %13 = tpu.matmul %12, %11, %cst_12 {dimension_numbers = #tpu.dot_dimension_numbers<[1], [0], [0], [1], [0, 0, 1, 1], [], []>} : vector<8x32xf32>, vector<32x256xf32>, vector<8x256xf32> -> vector<8x256xf32>
    %c0_13 = arith.constant 0 : index
    %c0_14 = arith.constant 0 : index
    %14 = vector.load %arg6[%c0_13, %c0_14] : memref<8x1xf32, #tpu.memory_space<vmem>>, vector<8x1xf32>
    %15 = vector.broadcast %14 : vector<8x1xf32> to vector<8x256xf32>
    %16 = arith.addf %13, %15 : vector<8x256xf32>
    %c0_15 = arith.constant 0 : index
    %c0_16 = arith.constant 0 : index
    %17 = vector.load %arg7[%c0_15, %c0_16] : memref<8x256xf32, #tpu.memory_space<vmem>>, vector<8x256xf32>
    tpu.vector_store %arg7[%c0_15, %c0_16], %16 {strides = array<i32>} : memref<8x256xf32, #tpu.memory_space<vmem>>, vector<8x256xf32>,
    return
  }
  func.func @transform_0(%arg0: i32) -> (i32, i32) {
    %c0_i32 = arith.constant 0 : i32
    %c0_i32_0 = arith.constant 0 : i32
    return %c0_i32, %arg0 : i32, i32
  }
  func.func @transform_1(%arg0: i32) -> (i32, i32) {
    %c0_i32 = arith.constant 0 : i32
    %c0_i32_0 = arith.constant 0 : i32
    %c0_i32_1 = arith.constant 0 : i32
    return %c0_i32, %c0_i32_0 : i32, i32
  }
  func.func @transform_2(%arg0: i32) -> (i32, i32) {
    %c0_i32 = arith.constant 0 : i32
    %c0_i32_0 = arith.constant 0 : i32
    %c0_i32_1 = arith.constant 0 : i32
    return %c0_i32, %c0_i32_0 : i32, i32
  }
  func.func @transform_3(%arg0: i32) -> (i32, i32) {
    %c0_i32 = arith.constant 0 : i32
    %c0_i32_0 = arith.constant 0 : i32
    %c0_i32_1 = arith.constant 0 : i32
    return %c0_i32, %c0_i32_0 : i32, i32
  }
  func.func @transform_4(%arg0: i32) -> (i32, i32) {
    %c0_i32 = arith.constant 0 : i32
    %c0_i32_0 = arith.constant 0 : i32
    %c0_i32_1 = arith.constant 0 : i32
    return %c0_i32, %c0_i32_0 : i32, i32
  }
  func.func @transform_5(%arg0: i32) -> (i32, i32) {
    %c0_i32 = arith.constant 0 : i32
    %c0_i32_0 = arith.constant 0 : i32
    %c0_i32_1 = arith.constant 0 : i32
    return %c0_i32, %c0_i32_0 : i32, i32
  }
  func.func @transform_6(%arg0: i32) -> (i32, i32) {
    %c0_i32 = arith.constant 0 : i32
    %c0_i32_0 = arith.constant 0 : i32
    return %c0_i32, %arg0 : i32, i32
  }
}

</mosaic_0001>

<bundles_post_ra>
// kernel: tpu_custom_call.1
= control target key start
LH: loop header
LB: loop body
LE: loop exit
PB: predicated region body
PF: predicated region fallthrough
CT: control target
= control target key end

     0   :  { %11 = vsyncpa [#allocation4], 0  ;;  %s1109_s0 = inlined_call_operand.vmem [shape: f32[16,512], index: 0, kind: input, shape index: {}]   ;;  %s1110_s1 = inlined_call_operand.vmem [shape: f32[32,16], index: 1, kind: input, shape index: {}]   ;;  %s1111_s2 = inlined_call_operand.vmem [shape: f32[32,1], index: 2, kind: input, shape index: {}]   ;;  %s1112_s3 = inlined_call_operand.hbm [shape: f32[32,32], index: 3, kind: input, shape index: {}]   ;;  %s1113_s4 = inlined_call_operand.vmem [shape: f32[8,32], index: 4, kind: input, shape index: {}]   ;;  %s1114_s5 = inlined_call_operand.vmem [shape: f32[8,1], index: 5, kind: input, shape index: {}]   ;;  %s1115_s6 = inlined_call_operand.hbm [shape: f32[8,512], index: 6, kind: output, shape index: {}]  }
   0x1   :  { %12 = vsyncpa [#allocation5], 0 }
   0x2   :  { %14 = vsyncpa [#allocation5 + $0x1], 0  ;;  %s940_s21 = smov 0   ;;  %s942_s22 = smov 0  }
   0x3   :  { %s944_s23 = smov 0   ;;  %s946_s24 = smov 0  }
   0x4 LB: > { %s961_s25 = sadd.s32 4294967295, %s897_s24   ;;  %s724_s26 = sadd.s32 4294967294, %s897_s24   ;;  %s897_s24 = sphi %s946_s24, %s1126_s24   ;;  %s893_s23 = sphi %s944_s23, %s1125_s23   ;;  %s889_s22 = sphi %s942_s22, %s1124_s22   ;;  %s885_s21 = sphi %s940_s21, %s1123_s21  }
   0x5   : > { %s965_s27 = sadd.s32 1, %s897_s24   ;;  %s27_s28 = sadd.s32 1, %s893_s23 }
   0x6   : > { %s24_s29 = ssub.s32 %s897_s24, %s965_s27  ;;  %p34_p0 = scmp.ne.s32.totalorder %s893_s23, %s889_s22 }
   0x7   : > { %p25_p1 = scmp.eq.s32.totalorder %s24_s29, 0  ;;  %p35_p2 = scmp.eq.s32.totalorder %s897_s24, 0 }
   0x8   : > { %p169_p3 = scmp.eq.s32.totalorder %s961_s25, 1  ;;  %p174_p4 = scmp.ne.s32.totalorder %s889_s22, %s885_s21 }
   0x9   : > { %s977_s30 = scalar_select %p25_p1, %s893_s23, %s27_s28  }
   0xa   : > { %p979_p5 = por %p35_p2, %p34_p0  ;;  %p983_p6 = por %p169_p3, %p34_p0 }
   0xb   : > { %p175_p7 = scmp.eq.s32.totalorder %s724_s26, 1  ;;  %p725_p8 = scmp.ge.s32.totalorder %s897_s24, 1 }
   0xc   : > { %s1118_s8 = scalar_select %p983_p6, 1, 0 }
   0xd   : > { %p182_p9 = scmp.lt.s32.totalorder %s897_s24, 3  ;;  %p989_p10 = por %p175_p7, %p174_p4 }
   0xe   : > { %p765_p11 = scmp.eq.s32.totalorder %s961_s25, 0  ;;  %s899_s11 = smov [#allocation3]  }
   0xf   : > { %s1119_s9 = scalar_select %p989_p10, 1, 0 }
  0x10   : > { %p994_p12 = pnand %p725_p8, %p182_p9  ;;  %s200_s12 = sshll.u32 %s899_s11, 4  ;;  %s201_s12 = int_to_ptr.vmem [resolvable:$true] %s200_s12 }
  0x11   : > { %s818_s13 = scalar_lea.vmem %s201_s12, 512  ;;  %p826_p7 = scmp.lt.s32.totalorder %s201_s12, %s201_s12 }
  0x12   : > { %p757_p13 = pneg %p994_p12  ;;  %p819_p2 = scmp.ne.s32.totalorder %s201_s12, %s818_s13 }
  0x13   : > { %p827_p10 = scmp.lt.s32.totalorder %s818_s13, %s818_s13 }
  0x14   : > { %p758_p0 = pnand %p765_p11, %p757_p13 }
  0x15   : > { %p828_p6 = por %p827_p10, %p826_p7 }
  0x16   : > { %p809_p1 = pneg %p758_p0 }
  0x18   : > { %p821_p3 = pnand %p819_p2, %p809_p1 }
  0x1a   : > { %p822_p4 = pneg %p821_p3 }
  0x1c   : > { %p829_p8 = pnand %p828_p6, %p822_p4 }
  0x1e   : > { %832 = shalt.err (!%p829_p8)
}
  0x1f   : > { %s900_s14 = smov 128   ;;  %s901_s15 = smov 8  }
  0x20   : > { %760 = dma.hbm_to_vmem [thread:$0]  (!%p758_p0), %s1112_s3, 512, %s201_s12, [#allocation4], %s900_s14, %s900_s14, %s901_s15  }
  0x21   : > { %p727_p9 = scmp.ge.s32.totalorder %s897_s24, 2 }
  0x23   : > { %216 = sbr.rel (%p727_p9) target bundleno = 46 (0x2e), region = 36 }
  0x28   : > { %219 = sbr.rel (!%p979_p5) target bundleno = 46 (0x2e), region = 40  ;;  %s221_s18 = sand.u32 (%p979_p5), 1, %s893_s23  }
  0x29   : > { %s749_s19 = sshll.u32 (%p979_p5), %s897_s24, 4  ;;  %s728_s20 = sshll.u32 (%p979_p5), %s221_s18, 5 }
  0x2a   : > { %s226_s29 = scalar_lea.vmem (%p979_p5), %s1109_s0, %s749_s19  ;;  %s223_s11 = scalar_lea.vmem (%p979_p5), [#allocation2], %s728_s20 }
  0x2b   : > { %v239_v0 = vld [vmem:[%s226_s29] sm:$0xff] (%p979_p5)  ;;  %v241_v1 = vld [vmem:[%s226_s29 + $0x8] sm:$0xff] (%p979_p5) }
  0x2c   : > { %v243_v2 = vld [vmem:[%s226_s29 + $0x20] sm:$0xff] (%p979_p5)  ;;  %240 = vst [vmem:[%s223_s11] sm:$0xff] (%p979_p5), %v239_v0  ;;  %242 = vst [vmem:[%s223_s11 + $0x8] sm:$0xff] (%p979_p5), %v241_v1  ;;  %v245_v3 = vld [vmem:[%s226_s29 + $0x28] sm:$0xff] (%p979_p5) }
  0x2d   : > { %244 = vst [vmem:[%s223_s11 + $0x10] sm:$0xff] %v243_v2  ;;  %246 = vst [vmem:[%s223_s11 + $0x18] sm:$0xff] %v245_v3 }
  0x2e PF: > { %255 = sbr.rel (%p994_p12) target bundleno = 705 (0x2c1), region = 63  ;;  %s1018_s7 = sand.u32 (!%p994_p12), 1, %s889_s22  }
  0x2f   : > { %s732_s12 = sshll.u32 (!%p994_p12), %s1018_s7, 5 }
  0x30   : > { %s260_s13 = scalar_lea.vmem (!%p994_p12), [#allocation2], %s732_s12 }
  0x33   : > { %876 = dma.done.wait (%p765_p11), [#allocation4], 512  }
  0x34   : > { %878 = vsyncadd (%p765_p11), [#allocation4], 4294966784  ;;  %v902_v4 = vmov 0.0   ;;  %v903_v5 = vmov 0   ;;  %v296_v6 = vld [vmem:[%s260_s13 + $0x18] sm:$0xff]  ;;  %v295_v7 = vld [vmem:[%s260_s13 + $0x10] sm:$0xff] }
  0x35   : > { %402 = vmatprep.mubr.f32.mxu0 %v902_v4  ;;  %806 = vset.pattern.permute.xlu1 %v903_v5  ;;  %v294_v8 = vld [vmem:[%s260_s13 + $0x8] sm:$0xff]  ;;  %v293_v9 = vld [vmem:[%s260_s13] sm:$0xff]  ;;  %vm325_vm0 = vcmask 130048   ;;  %v304_v12 = vld [vmem:[%s1111_s2 + $0x18] sm:$0xff]  ;;  %vm439_vm1 = vcmask 261120   ;;  %s734_s19 = sshll.u32 %s1018_s7, 4 }
  0x36   : > { %805 = vset.pattern.permute.xlu0 %v903_v5  ;;  %516 = vmatprep.mubr.f32.mxu1 %v902_v4  ;;  %v297_v10 = vld [vmem:[%s1110_s1] sm:$0xff]  ;;  %v302_v11 = vld [vmem:[%s1111_s2 + $0x8] sm:$0xff]  ;;  %v303_v14 = vld [vmem:[%s1111_s2 + $0x10] sm:$0xff]  ;;  %s750_s20 = sshll.u32 %s961_s25, 8  ;;  %s290_s26 = scalar_lea.vmem [#allocation6], %s734_s19 }
  0x37   : > { %366 = vmatprep.subr.mxu0 %v296_v6  ;;  %312 = vperm.xlu1 %806, %v302_v11   ;;  %v301_v13 = vld [vmem:[%s1111_s2] sm:$0xff]  ;;  %v298_v15 = vld [vmem:[%s1110_s1 + $0x8] sm:$0xff]  ;;  %v299_v17 = vld [vmem:[%s1110_s1 + $0x10] sm:$0xff]  ;;  %s647_s28 = sshll.u32 %s290_s26, 4  ;;  %s645_s12 = scalar_lea.hbm %s1115_s6, %s750_s20  ;;  %s648_s28 = int_to_ptr.vmem [resolvable:$true] %s647_s28 }
  0x38   : > { %367 = vmatpush1.msra.mxu0 %v295_v7  ;;  %322 = vperm.xlu0 %805, %v304_v12   ;;  %v550_v16 = vld [vmem:[%s1114_s5] sm:$0xff]  ;;  %v300_v18 = vld [vmem:[%s1110_s1 + $0x18] sm:$0xff]  ;;  %v436_v48 = vld [vmem:[#allocation3 + $0x8] sm:$0xff]  ;;  %s633_s13 = scalar_lea.sflag [#allocation5], %s1018_s7  ;;  %s833_s10 = scalar_lea.vmem %s648_s28, 256 }
  0x39   : > { %368 = vmatprep.subr.mxu0 %v294_v8  ;;  %v435_v47 = vld [vmem:[#allocation3] sm:$0xff]  ;;  %v437_v49 = vld [vmem:[#allocation3 + $0x10] sm:$0xff]  ;;  %v438_v50 = vld [vmem:[#allocation3 + $0x18] sm:$0xff]  ;;  %p834_p5 = scmp.ne.s32.totalorder %s648_s28, %s833_s10  ;;  %p1121_p6 = scmp.ne.s32.totalorder %s1118_s8, 0 }
  0x3a   : > { %369 = vmatpush1.msra.mxu0 %v293_v9  ;;  %v549_v3 = vld [vmem:[%s1113_s4] sm:$0xff]  ;;  %s904_s14 = smov [#allocation6]  }
  0x3b   : > { %735 = vmatmul.mubr.msk.f32.vlgmr.msra.gmra.mxu0 %vm325_vm0, %v297_v10  ;;  %307 = vperm.xlu1 %806, %v301_v13   ;;  %p835_p10 = pnand %p834_p5, %p1121_p6  ;;  %s837_s25 = sshll.u32 %s904_s14, 4  ;;  %s838_s25 = int_to_ptr.vmem [resolvable:$false] %s837_s25 }
  0x3c   : > { %408 = vmatprep.mubr.f32.mxu0 %v902_v4  ;;  %317 = vperm.xlu0 %805, %v303_v14   ;;  %s839_s15 = scalar_lea.vmem %s838_s25, 512  ;;  %p840_p12 = scmp.lt.s32.totalorder %s648_s28, %s838_s25 }
  0x3d   : > { %p836_p11 = pneg %p835_p10  ;;  %p841_p13 = scmp.lt.s32.totalorder %s839_s15, %s833_s10 }
  0x3f   : > { %736 = vmatmul.mubr.msk.f32.gmra.mxu0 %vm325_vm0, %v298_v15  ;;  %p842_p0 = por %p841_p13, %p840_p12 }
  0x40   : > { %414 = vmatprep.mubr.f32.mxu0 %v902_v4  ;;  %553 = vperm.xlu0 %805, %v550_v16  }
  0x41   : > { %p843_p1 = pnand %p842_p0, %p836_p11 }
  0x43   : > { %737 = vmatmul.mubr.msk.f32.gmra.mxu0 %vm325_vm0, %v299_v17 }
  0x44   : > { %420 = vmatprep.mubr.f32.mxu0 %v902_v4 }
  0x47   : > { %738 = vmatmul.mubr.msk.f32.gmra.mxu0 %vm325_vm0, %v300_v18 }
  0x48   : > { %623 = vmatprep.mubr.f32.mxu0 %v902_v4 }
  0xb2   : > { %v313_v26 = vpop.permute.xlu1 %312 }
  0xb3   : > { %v323_v23 = vpop.permute.xlu0 %322 }
  0xb6   : > { %v308_v34 = vpop.permute.xlu1 %307 }
  0xb7   : > { %v318_v28 = vpop.permute.xlu0 %317 }
  0xfb   : > { %v404_v19 = vpop.f32.mrf.mxu0 }
  0xfc   : > { %v405_v41 = vadd.f32 %v404_v19, %v308_v34 }
  0xfd   : > { %v406_v20 = vpop.f32.mrf.mxu0 }
  0xfe   : > { %v407_v39 = vadd.f32 %v406_v20, %v308_v34  ;;  %v427_v46 = vmax.f32 %v405_v41, 0.0 }
  0xff   : > { %v410_v21 = vpop.f32.mrf.mxu0 }
 0x100   : > { %v411_v37 = vadd.f32 %v410_v21, %v313_v26  ;;  %v428_v45 = vmax.f32 %v407_v39, 0.0 }
 0x101   : > { %v412_v22 = vpop.f32.mrf.mxu0 }
 0x102   : > { %v413_v35 = vadd.f32 %v412_v22, %v313_v26  ;;  %v429_v44 = vmax.f32 %v411_v37, 0.0 }
 0x103   : > { %v416_v24 = vpop.f32.mrf.mxu0 }
 0x104   : > { %v417_v33 = vadd.f32 %v416_v24, %v318_v28  ;;  %v430_v43 = vmax.f32 %v413_v35, 0.0 }
 0x105   : > { %v418_v25 = vpop.f32.mrf.mxu0 }
 0x106   : > { %v419_v31 = vadd.f32 %v418_v25, %v318_v28  ;;  %v431_v42 = vmax.f32 %v417_v33, 0.0 }
 0x107   : > { %v422_v27 = vpop.f32.mrf.mxu0 }
 0x108   : > { %v423_v29 = vadd.f32 %v422_v27, %v323_v23  ;;  %v432_v40 = vmax.f32 %v419_v31, 0.0 }
 0x109   : > { %v424_v30 = vpop.f32.mrf.mxu0 }
 0x10a   : > { %v425_v32 = vadd.f32 %v424_v30, %v323_v23  ;;  %v433_v38 = vmax.f32 %v423_v29, 0.0 }
 0x10c   : > { %v434_v36 = vmax.f32 %v425_v32, 0.0 }
 0x10e   : > { %476 = vmatprep.subr.mxu1 %v434_v36 }
 0x10f   : > { %477 = vmatpush1.msra.mxu1 %v433_v38 }
 0x110   : > { %478 = vmatprep.subr.mxu1 %v432_v40 }
 0x111   : > { %479 = vmatpush1.msra.mxu1 %v431_v42 }
 0x112   : > { %480 = vmatprep.subr.mxu1 %v430_v43 }
 0x113   : > { %481 = vmatpush1.msra.mxu1 %v429_v44 }
 0x114   : > { %482 = vmatprep.subr.mxu1 %v428_v45 }
 0x115   : > { %483 = vmatpush1.msra.mxu1 %v427_v46 }
 0x116   : > { %739 = vmatmul.mubr.msk.f32.vlgmr.msra.gmra.mxu1 %vm439_vm1, %v435_v47 }
 0x117   : > { %522 = vmatprep.mubr.f32.mxu1 %v902_v4 }
 0x11a   : > { %740 = vmatmul.mubr.msk.f32.gmra.mxu1 %vm439_vm1, %v436_v48 }
 0x11b   : > { %528 = vmatprep.mubr.f32.mxu1 %v902_v4 }
 0x11e   : > { %741 = vmatmul.mubr.msk.f32.gmra.mxu1 %vm439_vm1, %v437_v49 }
 0x11f   : > { %534 = vmatprep.mubr.f32.mxu1 %v902_v4  ;;  %v554_v4 = vpop.permute.xlu0 %553 }
 0x122   : > { %742 = vmatmul.mubr.msk.f32.gmra.mxu1 %vm439_vm1, %v438_v50 }
 0x1d6   : > { %v518_v51 = vpop.f32.mrf.mxu1 }
 0x1d7   : > { %v541_v2 = vmax.f32 %v518_v51, 0.0 }
 0x1d8   : > { %v520_v52 = vpop.f32.mrf.mxu1 }
 0x1d9   : > { %v542_v1 = vmax.f32 %v520_v52, 0.0 }
 0x1da   : > { %v524_v53 = vpop.f32.mrf.mxu1 }
 0x1db   : > { %v543_v0 = vmax.f32 %v524_v53, 0.0 }
 0x1dc   : > { %v526_v54 = vpop.f32.mrf.mxu1 }
 0x1dd   : > { %v544_v63 = vmax.f32 %v526_v54, 0.0 }
 0x1de   : > { %v530_v55 = vpop.f32.mrf.mxu1 }
 0x1df   : > { %v545_v62 = vmax.f32 %v530_v55, 0.0 }
 0x1e0   : > { %v532_v56 = vpop.f32.mrf.mxu1 }
 0x1e1   : > { %v546_v61 = vmax.f32 %v532_v56, 0.0 }
 0x1e2   : > { %v536_v57 = vpop.f32.mrf.mxu1 }
 0x1e3   : > { %v547_v60 = vmax.f32 %v536_v57, 0.0 }
 0x1e4   : > { %v538_v58 = vpop.f32.mrf.mxu1 }
 0x1e5   : > { %v548_v59 = vmax.f32 %v538_v58, 0.0 }
 0x1e7   : > { %583 = vmatprep.subr.mxu0 %v548_v59 }
 0x1e8   : > { %584 = vmatpush1.msra.mxu0 %v547_v60 }
 0x1e9   : > { %585 = vmatprep.subr.mxu0 %v546_v61 }
 0x1ea   : > { %586 = vmatpush1.msra.mxu0 %v545_v62 }
 0x1eb   : > { %587 = vmatprep.subr.mxu0 %v544_v63 }
 0x1ec   : > { %588 = vmatpush1.msra.mxu0 %v543_v0 }
 0x1ed   : > { %589 = vmatprep.subr.mxu0 %v542_v1 }
 0x1ee   : > { %590 = vmatpush1.msra.mxu0 %v541_v2 }
 0x1ef   : > { %743 = vmatmul.mubr.msk.f32.vlgmr.msra.gmra.mxu0 %vm439_vm1, %v549_v3 }
 0x2af   : > { %v625_v5 = vpop.f32.mrf.mxu0 }
 0x2b0   : > { %v626_v6 = vadd.f32 %v625_v5, %v554_v4 }
 0x2b1   : > { %v627_v7 = vpop.f32.mrf.mxu0 }
 0x2b2   : > { %630 = vst [vmem:[%s290_s26] sm:$0xff] %v626_v6  ;;  %v628_v8 = vadd.f32 %v627_v7, %v554_v4 }
 0x2b4   : > { %631 = vst [vmem:[%s290_s26 + $0x8] sm:$0xff] %v628_v8 }
 0x2b5   : > { %846 = shalt.err (!%p843_p1)
}
 0x2b6   : > { %s847_s16 = scalar_lea.hbm %s645_s12, 256  ;;  %s851_s18 = scalar_lea.hbm %s1115_s6, 512 }
 0x2b7   : > { %p848_p2 = scmp.ne.s32.totalorder %s645_s12, %s847_s16  ;;  %p852_p7 = scmp.lt.s32.totalorder %s645_s12, %s1115_s6 }
 0x2b8   : > { %p853_p8 = scmp.lt.s32.totalorder %s851_s18, %s847_s16 }
 0x2b9   : > { %p849_p3 = pnand %p848_p2, %p1121_p6 }
 0x2ba   : > { %p854_p5 = por %p853_p8, %p852_p7 }
 0x2bb   : > { %p850_p4 = pneg %p849_p3 }
 0x2bd   : > { %p855_p10 = pnand %p854_p5, %p850_p4 }
 0x2bf   : > { %858 = shalt.err (!%p855_p10)
}
 0x2c0   : > { %755 = dma.vmem_to_hbm [thread:$0]  (%p1121_p6), %s648_s28, 256, %s645_s12, %s633_s13  }
 0x2c1 PF: > { %s659_s26 = sand.u32 1, %s885_s21   ;;  %p1122_p11 = scmp.ne.s32.totalorder %s1119_s9, 0 }
 0x2c2   : > { %s660_s29 = scalar_lea.sflag [#allocation5], %s659_s26 }
 0x2c3   : > { %p762_p12 = pnand %p727_p9, %p1122_p11 }
 0x2c5   : > { %p763_p13 = pneg %p762_p12 }
 0x2c7   : > { %880 = dma.done.wait (%p763_p13), %s660_s29, 256  }
 0x2c8   : > { %882 = vsyncadd (%p763_p13), %s660_s29, 4294967040  ;;  %p17_p0 = scmp.ge.s32.totalorder %s965_s27, 4   ;;  %s1123_s21 = smov %s889_s22 }
 0x2c9   : > { %s1124_s22 = smov %s893_s23  ;;  %s1125_s23 = smov %s977_s30 }
 0x2ca   : > { %s1126_s24 = smov %s965_s27  ;;  %19 = sbr.rel (!%p17_p0) target bundleno = 4 (0x4), region = 112 }
 0x2cf   :  { %665 = vsyncpa [#allocation4], 1 }
 0x2d0   :  { %667 = vsyncpa [#allocation4 + $0x1], 1 }
 0x2d1   :  { %668 = vsyncpa [#allocation5], 1 }
 0x2d2   :  { %670 = vsyncpa [#allocation5 + $0x1], 1 }

</bundles_post_ra>
